<compile_context>
chip_gen: v7x
topology: tpu7x:2x2x1
jax: 0.10.0
libtpu: 0.0.40
codegen_flags: <defaults>
</compile_context>

<pallas_src>
import jax
import jax.numpy as jnp
from jax.experimental import pallas as pl
from jax.experimental.pallas import tpu as pltpu


_TILE_B_MAX = 8192  # rows per grid step; multiple of 8, well inside v7x scoped VMEM


def _round_up(n, m):
    return ((n + m - 1) // m) * m


def _choose_tile_b(B):
    """Batch-tile rows: multiple of 8, capped, and >=2 grid steps for large B."""
    if B <= 8:
        # Single tile equal to the full batch dim (block == array dim is legal).
        return B
    half = _round_up(pl.cdiv(B, 2), 8)  # aim for >=2 steps -> both v7x TCs engaged
    return min(_TILE_B_MAX, half)


def _actor_kernel(x_ref, w1_ref, b1_ref, w2_ref, b2_ref, w3_ref, b3_ref, o_ref):
    # Hidden layer 1: Linear (f32 MXU, f32 accumulate) + ReLU
    x = x_ref[...]
    h1 = jnp.dot(x, w1_ref[...], preferred_element_type=jnp.float32) + b1_ref[...]
    h1 = jnp.maximum(h1, 0.0)
    # Hidden layer 2: Linear + ReLU  (hidden_depth = 2)
    h2 = jnp.dot(h1, w2_ref[...], preferred_element_type=jnp.float32) + b2_ref[...]
    h2 = jnp.maximum(h2, 0.0)
    # Output layer: Linear
    logits = jnp.dot(h2, w3_ref[...], preferred_element_type=jnp.float32) + b3_ref[...]
    # Softmax(dim=-1), numerically stable, exact normalization.
    m = jnp.max(logits, axis=-1, keepdims=True)
    e = jnp.exp(logits - m)
    denom = jnp.sum(e, axis=-1, keepdims=True)
    o_ref[...] = (e / denom).astype(o_ref.dtype)


def discrete_actor_forward(obs, params):
    """DiscreteActor.forward, obs_type='rom'.

    obs: (B, d1, d2, d3) float32 array (ndim == 4, values <= 1.0).
    params: (w1, b1, w2, b2, w3, b3), weights stored (in, out) — transposed vs torch.
    Returns action_probabilities of shape (B, action_dim), float32.
    """
    assert obs.ndim == 4
    B = obs.shape[0]
    D = obs.shape[1] * obs.shape[2] * obs.shape[3]
    w1, b1, w2, b2, w3, b3 = params
    H = w1.shape[1]
    A = w3.shape[1]

    # Flatten only; keep f32, no wrapper-side dtype conversion / padding passes.
    x = obs.reshape(B, D)

    tile_b = _choose_tile_b(B)
    grid = (pl.cdiv(B, tile_b),)  # ragged last block handled by Pallas masking

    x_spec = pl.BlockSpec((tile_b, D), lambda i: (i, 0))
    o_spec = pl.BlockSpec((tile_b, A), lambda i: (i, 0))
    # Weights/biases: constant index_map -> VMEM-resident across all grid steps.
    resident = lambda arr: pl.BlockSpec(arr.shape, lambda i, _n=arr.ndim: (0,) * _n)

    cost = pl.CostEstimate(
        flops=2 * B * (D * H + H * H + H * A),
        transcendentals=B * A,                       # exp per logit
        bytes_accessed=(x.size * 4                   # f32 activations in
                        + (w1.size + w2.size + w3.size) * 4
                        + (b1.size + b2.size + b3.size) * 4
                        + B * A * 4),                # f32 probabilities out
    )

    out = pl.pallas_call(
        _actor_kernel,
        out_shape=jax.ShapeDtypeStruct((B, A), jnp.float32),
        grid=grid,
        in_specs=[x_spec,
                  resident(w1), resident(b1),
                  resident(w2), resident(b2),
                  resident(w3), resident(b3)],
        out_specs=o_spec,
        compiler_params=pltpu.CompilerParams(dimension_semantics=("parallel",)),
        cost_estimate=cost,
    )(x, w1, b1, w2, b2, w3, b3)
    return out


def init_params(key, obs_dim, hidden_dim, action_dim):
    """Deterministic synthetic init, already in kernel dtypes (f32).

    Weights stored (in, out), i.e. transposed vs torch nn.Linear.weight."""
    k1, k2, k3 = jax.random.split(key, 3)
    scale = 0.1
    w1 = scale * jax.random.normal(k1, (obs_dim, hidden_dim), jnp.float32)
    b1 = jnp.zeros((1, hidden_dim), jnp.float32)
    w2 = scale * jax.random.normal(k2, (hidden_dim, hidden_dim), jnp.float32)
    b2 = jnp.zeros((1, hidden_dim), jnp.float32)
    w3 = scale * jax.random.normal(k3, (hidden_dim, action_dim), jnp.float32)
    b3 = jnp.zeros((1, action_dim), jnp.float32)
    return (w1, b1, w2, b2, w3, b3)


def _reference_forward(obs, params):
    """Plain-JAX f32 reference matching the PyTorch module."""
    B = obs.shape[0]
    D = obs.shape[1] * obs.shape[2] * obs.shape[3]
    w1, b1, w2, b2, w3, b3 = params
    x = obs.reshape(B, D)
    h = jnp.maximum(x @ w1 + b1, 0.0)
    h = jnp.maximum(h @ w2 + b2, 0.0)
    return jax.nn.softmax(h @ w3 + b3, axis=-1)


if __name__ == "__main__":
    # Small shapes consistent with the module:
    # obs_shape = (1, 1, 64) ('rom' obs, ndim==4 with batch), hidden_dim=32,
    # hidden_depth=2, action_dim=8.
    D, H, A = 64, 32, 8

    key = jax.random.PRNGKey(0)
    k_obs, k_obs2, k_par = jax.random.split(key, 3)
    params = init_params(k_par, D, H, A)

    # --- Case 1: tiny batch (B=2), single-tile path ---
    B = 2
    obs = jax.random.uniform(k_obs, (B, 1, 1, D), jnp.float32, minval=-1.0, maxval=1.0)
    assert float(jnp.max(obs)) <= 1.0   # mirrors the torch assert
    assert obs.ndim == 4

    probs = discrete_actor_forward(obs, params)
    probs = jax.block_until_ready(probs)
    assert probs.shape == (B, A)
    assert probs.shape[-1] == A, "Actor output the wrong size"

    ref = _reference_forward(obs, params)
    assert jnp.allclose(probs, ref, atol=1e-5, rtol=1e-5)
    assert jnp.allclose(jnp.sum(probs, axis=-1), 1.0, atol=1e-5)

    # --- Case 2: batch not a tile multiple (exercises >=2 grid steps + ragged
    #     last block, no wrapper pad) ---
    B2 = 100
    obs2 = jax.random.uniform(k_obs2, (B2, 1, 1, D), jnp.float32, minval=-1.0, maxval=1.0)
    probs2 = jax.block_until_ready(discrete_actor_forward(obs2, params))
    assert probs2.shape == (B2, A)
    ref2 = _reference_forward(obs2, params)
    assert jnp.allclose(probs2, ref2, atol=1e-5, rtol=1e-5)
    assert jnp.allclose(jnp.sum(probs2, axis=-1), 1.0, atol=1e-5)

    print("KERNEL_OK")
</pallas_src>

<mosaic_0001>
module attributes {stable_mosaic.version = 11 : i64} {
  func.func @_actor_kernel(%arg0: i32, %arg1: memref<2x64xf32, #tpu.memory_space<vmem>>, %arg2: memref<64x32xf32, #tpu.memory_space<vmem>>, %arg3: memref<1x32xf32, #tpu.memory_space<vmem>>, %arg4: memref<32x32xf32, #tpu.memory_space<vmem>>, %arg5: memref<1x32xf32, #tpu.memory_space<vmem>>, %arg6: memref<32x8xf32, #tpu.memory_space<vmem>>, %arg7: memref<1x8xf32, #tpu.memory_space<vmem>>, %arg8: memref<2x8xf32, #tpu.memory_space<vmem>>) attributes {dimension_semantics = [#tpu.dimension_semantics<parallel>], iteration_bounds = array<i64: 1>, scalar_prefetch = 0 : i64, scratch_operands = 0 : i64, tpu.core_type = #tpu.core_type<tc>, window_params = [{transform_indices = @transform_0, window_bounds = array<i64: 2, 64>}, {pipeline_mode = #tpu.pipeline_mode<synchronous>, transform_indices = @transform_1, window_bounds = array<i64: 64, 32>}, {pipeline_mode = #tpu.pipeline_mode<synchronous>, transform_indices = @transform_2, window_bounds = array<i64: 1, 32>}, {pipeline_mode = #tpu.pipeline_mode<synchronous>, transform_indices = @transform_3, window_bounds = array<i64: 32, 32>}, {pipeline_mode = #tpu.pipeline_mode<synchronous>, transform_indices = @transform_4, window_bounds = array<i64: 1, 32>}, {pipeline_mode = #tpu.pipeline_mode<synchronous>, transform_indices = @transform_5, window_bounds = array<i64: 32, 8>}, {pipeline_mode = #tpu.pipeline_mode<synchronous>, transform_indices = @transform_6, window_bounds = array<i64: 1, 8>}, {transform_indices = @transform_7, window_bounds = array<i64: 2, 8>}]} {
    %c0 = arith.constant 0 : index
    %c0_0 = arith.constant 0 : index
    %0 = vector.load %arg1[%c0, %c0_0] : memref<2x64xf32, #tpu.memory_space<vmem>>, vector<2x64xf32>
    %c0_1 = arith.constant 0 : index
    %c0_2 = arith.constant 0 : index
    %1 = vector.load %arg2[%c0_1, %c0_2] : memref<64x32xf32, #tpu.memory_space<vmem>>, vector<64x32xf32>
    %cst = arith.constant dense<0.000000e+00> : vector<2x32xf32>
    %2 = tpu.matmul %0, %1, %cst {dimension_numbers = #tpu.dot_dimension_numbers<[1], [0], [0], [1], [0, 0, 1, 1], [], []>} : vector<2x64xf32>, vector<64x32xf32>, vector<2x32xf32> -> vector<2x32xf32>
    %c0_3 = arith.constant 0 : index
    %c0_4 = arith.constant 0 : index
    %3 = vector.load %arg3[%c0_3, %c0_4] : memref<1x32xf32, #tpu.memory_space<vmem>>, vector<1x32xf32>
    %4 = vector.broadcast %3 : vector<1x32xf32> to vector<2x32xf32>
    %5 = arith.addf %2, %4 : vector<2x32xf32>
    %cst_5 = arith.constant 0.000000e+00 : f32
    %6 = vector.broadcast %cst_5 : f32 to vector<2x32xf32>
    %7 = arith.maximumf %5, %6 : vector<2x32xf32>
    %c0_6 = arith.constant 0 : index
    %c0_7 = arith.constant 0 : index
    %8 = vector.load %arg4[%c0_6, %c0_7] : memref<32x32xf32, #tpu.memory_space<vmem>>, vector<32x32xf32>
    %cst_8 = arith.constant dense<0.000000e+00> : vector<2x32xf32>
    %9 = tpu.matmul %7, %8, %cst_8 {dimension_numbers = #tpu.dot_dimension_numbers<[1], [0], [0], [1], [0, 0, 1, 1], [], []>} : vector<2x32xf32>, vector<32x32xf32>, vector<2x32xf32> -> vector<2x32xf32>
    %c0_9 = arith.constant 0 : index
    %c0_10 = arith.constant 0 : index
    %10 = vector.load %arg5[%c0_9, %c0_10] : memref<1x32xf32, #tpu.memory_space<vmem>>, vector<1x32xf32>
    %11 = vector.broadcast %10 : vector<1x32xf32> to vector<2x32xf32>
    %12 = arith.addf %9, %11 : vector<2x32xf32>
    %cst_11 = arith.constant 0.000000e+00 : f32
    %13 = vector.broadcast %cst_11 : f32 to vector<2x32xf32>
    %14 = arith.maximumf %12, %13 : vector<2x32xf32>
    %c0_12 = arith.constant 0 : index
    %c0_13 = arith.constant 0 : index
    %15 = vector.load %arg6[%c0_12, %c0_13] : memref<32x8xf32, #tpu.memory_space<vmem>>, vector<32x8xf32>
    %cst_14 = arith.constant dense<0.000000e+00> : vector<2x8xf32>
    %16 = tpu.matmul %14, %15, %cst_14 {dimension_numbers = #tpu.dot_dimension_numbers<[1], [0], [0], [1], [0, 0, 1, 1], [], []>} : vector<2x32xf32>, vector<32x8xf32>, vector<2x8xf32> -> vector<2x8xf32>
    %c0_15 = arith.constant 0 : index
    %c0_16 = arith.constant 0 : index
    %17 = vector.load %arg7[%c0_15, %c0_16] : memref<1x8xf32, #tpu.memory_space<vmem>>, vector<1x8xf32>
    %18 = vector.broadcast %17 : vector<1x8xf32> to vector<2x8xf32>
    %19 = arith.addf %16, %18 : vector<2x8xf32>
    %cst_17 = arith.constant dense<0xFF800000> : vector<2xf32>
    %20 = vector.multi_reduction <maximumf>, %19, %cst_17 [1] : vector<2x8xf32> to vector<2xf32>
    %21 = vector.shape_cast %20 : vector<2xf32> to vector<2x1xf32>
    %22 = vector.broadcast %21 : vector<2x1xf32> to vector<2x8xf32>
    %23 = arith.subf %19, %22 : vector<2x8xf32>
    %24 = math.exp %23 : vector<2x8xf32>
    %cst_18 = arith.constant dense<0.000000e+00> : vector<2xf32>
    %25 = vector.multi_reduction <add>, %24, %cst_18 [1] : vector<2x8xf32> to vector<2xf32>
    %26 = vector.shape_cast %25 : vector<2xf32> to vector<2x1xf32>
    %27 = vector.broadcast %26 : vector<2x1xf32> to vector<2x8xf32>
    %28 = arith.divf %24, %27 : vector<2x8xf32>
    %c0_19 = arith.constant 0 : index
    %c0_20 = arith.constant 0 : index
    %29 = vector.load %arg8[%c0_19, %c0_20] : memref<2x8xf32, #tpu.memory_space<vmem>>, vector<2x8xf32>
    tpu.vector_store %arg8[%c0_19, %c0_20], %28 {strides = array<i32>} : memref<2x8xf32, #tpu.memory_space<vmem>>, vector<2x8xf32>,
    return
  }
  func.func @transform_0(%arg0: i32) -> (i32, i32) {
    %c0_i32 = arith.constant 0 : i32
    %c0_i32_0 = arith.constant 0 : i32
    return %arg0, %c0_i32 : i32, i32
  }
  func.func @transform_1(%arg0: i32) -> (i32, i32) {
    %c0_i32 = arith.constant 0 : i32
    %c0_i32_0 = arith.constant 0 : i32
    %c0_i32_1 = arith.constant 0 : i32
    return %c0_i32, %c0_i32_0 : i32, i32
  }
  func.func @transform_2(%arg0: i32) -> (i32, i32) {
    %c0_i32 = arith.constant 0 : i32
    %c0_i32_0 = arith.constant 0 : i32
    %c0_i32_1 = arith.constant 0 : i32
    return %c0_i32, %c0_i32_0 : i32, i32
  }
  func.func @transform_3(%arg0: i32) -> (i32, i32) {
    %c0_i32 = arith.constant 0 : i32
    %c0_i32_0 = arith.constant 0 : i32
    %c0_i32_1 = arith.constant 0 : i32
    return %c0_i32, %c0_i32_0 : i32, i32
  }
  func.func @transform_4(%arg0: i32) -> (i32, i32) {
    %c0_i32 = arith.constant 0 : i32
    %c0_i32_0 = arith.constant 0 : i32
    %c0_i32_1 = arith.constant 0 : i32
    return %c0_i32, %c0_i32_0 : i32, i32
  }
  func.func @transform_5(%arg0: i32) -> (i32, i32) {
    %c0_i32 = arith.constant 0 : i32
    %c0_i32_0 = arith.constant 0 : i32
    %c0_i32_1 = arith.constant 0 : i32
    return %c0_i32, %c0_i32_0 : i32, i32
  }
  func.func @transform_6(%arg0: i32) -> (i32, i32) {
    %c0_i32 = arith.constant 0 : i32
    %c0_i32_0 = arith.constant 0 : i32
    %c0_i32_1 = arith.constant 0 : i32
    return %c0_i32, %c0_i32_0 : i32, i32
  }
  func.func @transform_7(%arg0: i32) -> (i32, i32) {
    %c0_i32 = arith.constant 0 : i32
    %c0_i32_0 = arith.constant 0 : i32
    return %arg0, %c0_i32 : i32, i32
  }
}

</mosaic_0001>

<bundles_post_ra>
// kernel: tpu_custom_call.1
= control target key start
LH: loop header
LB: loop body
LE: loop exit
PB: predicated region body
PF: predicated region fallthrough
CT: control target
= control target key end

     0   :  { %v437_v3 = vmov 0.0|0.0   ;;  %vm438_vm0 = vmmov 0   ;;  %v439_v6 = vmov 0.0   ;;  %s561_s0 = inlined_call_operand.vmem [shape: f32[2,64], index: 0, kind: input, shape index: {}]   ;;  %s562_s1 = inlined_call_operand.vmem [shape: f32[64,32], index: 1, kind: input, shape index: {}]   ;;  %s563_s2 = inlined_call_operand.vmem [shape: f32[1,32], index: 2, kind: input, shape index: {}]   ;;  %s564_s3 = inlined_call_operand.vmem [shape: f32[32,32], index: 3, kind: input, shape index: {}]   ;;  %s565_s4 = inlined_call_operand.vmem [shape: f32[1,32], index: 4, kind: input, shape index: {}]   ;;  %s566_s5 = inlined_call_operand.vmem [shape: f32[32,8], index: 5, kind: input, shape index: {}]   ;;  %s567_s6 = inlined_call_operand.vmem [shape: f32[1,8], index: 6, kind: input, shape index: {}]   ;;  %s568_s7 = inlined_call_operand.hbm [shape: f32[2,8], index: 7, kind: output, shape index: {}]  }
   0x1   :  { %v28_v0 = vld [vmem:[%s562_s1] sm:$0xff]  ;;  %v29_v1 = vld [vmem:[%s562_s1 + $0x8] sm:$0xff]  ;;  %v30_v2 = vld [vmem:[%s562_s1 + $0x10] sm:$0xff]  ;;  %381 = vmatprep.subr.bf16.mxu0 %v437_v3  ;;  %356 = vmatprep.mubr.msk.f32.mxu0 %vm438_vm0, %v439_v6 }
   0x2   :  { %v382_v4 = vpack.c.bf16 %v29_v1, %v28_v0  ;;  %v31_v5 = vld [vmem:[%s562_s1 + $0x18] sm:$0xff]  ;;  %393 = vmatprep.subr.bf16.mxu1 %v437_v3  ;;  %367 = vmatprep.mubr.msk.f32.mxu1 %vm438_vm0, %v439_v6  ;;  %v118_v8 = vld [vmem:[%s564_s3] sm:$0xff]  ;;  %v119_v9 = vld [vmem:[%s564_s3 + $0x8] sm:$0xff] }
   0x3   :  { %v385_v7 = vpack.c.bf16 %v31_v5, %v30_v2  ;;  %v32_v10 = vld [vmem:[%s562_s1 + $0x20] sm:$0xff]  ;;  %v33_v11 = vld [vmem:[%s562_s1 + $0x28] sm:$0xff]  ;;  %v394_v12 = vpack.c.bf16 %v119_v9, %v118_v8 }
   0x4   :  { %383 = vmatpush3.bf16.msra.mxu0 %v382_v4 }
   0x5   :  { %384 = vmatprep.subr.bf16.mxu0 %v437_v3 }
   0x6   :  { %12 = vsyncpa [#allocation3], 0  ;;  %395 = vmatpush3.bf16.msra.mxu1 %v394_v12  ;;  %v388_v13 = vpack.c.bf16 %v33_v11, %v32_v10  ;;  %v34_v14 = vld [vmem:[%s562_s1 + $0x30] sm:$0xff]  ;;  %v35_v15 = vld [vmem:[%s562_s1 + $0x38] sm:$0xff]  ;;  %vm43_vm1 = vcmask 523264   ;;  %vm129_vm2 = vcmask 261120  }
   0x7   :  { %396 = vmatprep.subr.bf16.mxu1 %v437_v3  ;;  %v391_v16 = vpack.c.bf16 %v35_v15, %v34_v14  ;;  %v27_v17 = vld [vmem:[%s561_s0] sm:$0x3]  ;;  %v120_v18 = vld [vmem:[%s564_s3 + $0x10] sm:$0xff]  ;;  %v121_v19 = vld [vmem:[%s564_s3 + $0x18] sm:$0xff]  ;;  %vm288_vm3 = vcmask 58368  }
   0x8   :  { %386 = vmatpush3.bf16.msra.mxu0 %v385_v7  ;;  %v397_v20 = vpack.c.bf16 %v121_v19, %v120_v18  ;;  %v315_v21 = vld [vmem:[%s563_s2] ss:$0 sm:$0xff]  ;;  %v205_v23 = vld [vmem:[%s566_s5 + $0x8] sm:$0xff]  ;;  %v206_v29 = vld [vmem:[%s566_s5 + $0x10] sm:$0xff] }
   0x9   :  { %387 = vmatprep.subr.bf16.mxu0 %v437_v3  ;;  %v204_v22 = vld [vmem:[%s566_s5] sm:$0xff]  ;;  %v207_v30 = vld [vmem:[%s566_s5 + $0x18] sm:$0xff] }
   0xa   :  { %398 = vmatpush3.bf16.msra.mxu1 %v397_v20  ;;  %v400_v27 = vpack.c.bf16 %v205_v23, %v204_v22  ;;  %v403_v31 = vpack.c.bf16 %v207_v30, %v206_v29  ;;  %v317_v32 = vld [vmem:[%s565_s4] ss:$0 sm:$0xff]  ;;  %s440_s4 = smov [#allocation2]  }
   0xb   :  { %399 = vmatprep.subr.bf16.mxu1 %v437_v3  ;;  %v319_v37 = vld [vmem:[%s567_s6] ss:$0 sm:$0xff]  ;;  %s307_s5 = sshll.u32 %s440_s4, 4  ;;  %s308_s5 = int_to_ptr.vmem [resolvable:$true] %s307_s5 }
   0xc   :  { %389 = vmatpush3.bf16.msra.mxu0 %v388_v13  ;;  %s413_s6 = scalar_lea.vmem %s308_s5, 32  ;;  %p418_p1 = scmp.lt.s32.totalorder %s308_s5, %s308_s5 }
   0xd   :  { %390 = vmatprep.subr.bf16.mxu0 %v437_v3  ;;  %p414_p0 = scmp.ne.s32.totalorder %s308_s5, %s413_s6  ;;  %p419_p2 = scmp.lt.s32.totalorder %s413_s6, %s413_s6 }
   0xf   :  { %p420_p3 = por %p419_p2, %p418_p1 }
  0x10   :  { %392 = vmatpush3.bf16.msra.mxu0 %v391_v16 }
  0x11   :  { %p421_p4 = pnand %p420_p3, %p414_p0 }
  0x13   :  { %357 = vmatmul.mubr.msk.f32.vlgmr.msra.gmra.mrb[0].mxu0 %vm43_vm1, %v27_v17 }
  0xe6   :  { %v113_v24 = vpop.f32.mrb[0].mxu0 }
  0xe7   :  { %v114_v25 = vadd.f32 %v315_v21, %v113_v24  ;;  %v358_v26 = vpop.f32.mrb[1].mxu0 }
  0xe9   :  { %v117_v28 = vmax.f32 %v114_v25, 0.0 }
  0xeb   :  { %368 = vmatmul.mubr.msk.f32.vlgmr.msra.gmra.mrb[0].mxu1 %vm129_vm2, %v117_v28 }
  0xec   :  { %401 = vmatpush3.bf16.msra.mxu1 %v400_v27  ;;  %378 = vmatprep.mubr.msk.f32.mxu1 %vm438_vm0, %v439_v6 }
  0xed   :  { %402 = vmatprep.subr.bf16.mxu1 %v437_v3 }
  0xf0   :  { %404 = vmatpush3.bf16.msra.mxu1 %v403_v31 }
 0x1be   :  { %v199_v33 = vpop.f32.mrb[0].mxu1 }
 0x1bf   :  { %v200_v34 = vadd.f32 %v317_v32, %v199_v33  ;;  %v369_v35 = vpop.f32.mrb[1].mxu1 }
 0x1c1   :  { %v203_v36 = vmax.f32 %v200_v34, 0.0 }
 0x1c3   :  { %379 = vmatmul.mubr.msk.f32.vlgmr.msra.gmra.mrb[2].mxu1 %vm129_vm2, %v203_v36 }
 0x296   :  { %v284_v38 = vpop.f32.mrb[2].mxu1 }
 0x297   :  { %v285_v39 = vadd.f32 %v319_v37, %v284_v38  ;;  %v380_v40 = vpop.f32.mrb[3].mxu1 }
 0x299   :  { %v289_v41 = vsel %vm288_vm3, %v285_v39, -inf }
 0x29a   :  { %290 = vmax.xlane.f32.xlu0 %v289_v41 }
 0x327   :  { %v291_v42 = vpop.xlane.xlu0 %290 }
 0x328   :  { %v292_v43 = vsub.f32 %v285_v39, %v291_v42 }
 0x32a   :  { %v293_v44 = vmul.f32 1.442695, %v292_v43 }
 0x32c   :  { %409 = vpow2.f32 %v293_v44 }
 0x336   :  { %v410_v45 = vpop.eup %409 }
 0x337   :  { %v295_v46 = vsel %vm288_vm3, %v410_v45, 0.0 }
 0x338   :  { %296 = vadd.xlane.f32.xlu0 %v295_v46 }
 0x3c5   :  { %v297_v47 = vpop.xlane.xlu0 %296 }
 0x3c6   :  { %411 = vrcp.f32 %v297_v47 }
 0x3d0   :  { %v412_v48 = vpop.eup %411 }
 0x3d1   :  { %v299_v49 = vmul.f32 %v412_v48, %v410_v45 }
 0x3d3   :  { %300 = vst.msk [vmem:[#allocation2] sm:$0x3] %vm288_vm3, %v299_v49 }
 0x3d4   :  { %424 = shalt.err (!%p421_p4)
}
 0x3d5   :  { %s425_s16 = scalar_lea.hbm %s568_s7, 32 }
 0x3d6   :  { %p426_p5 = scmp.ne.s32.totalorder %s568_s7, %s425_s16  ;;  %p429_p6 = scmp.lt.u32.totalorder %s425_s16, %s568_s7 }
 0x3d8   :  { %p431_p7 = pnand %p429_p6, %p426_p5 }
 0x3da   :  { %434 = shalt.err (!%p431_p7)
}
 0x3db   :  { %310 = dma.vmem_to_hbm [thread:$0]  %s308_s5, 32, %s568_s7, [#allocation3]  }
 0x3dc   :  { %435 = dma.done.wait [#allocation3], 32  }
 0x3dd   :  { %436 = vsyncadd [#allocation3], 4294967264 }
 0x3de   :  { %314 = vsyncpa [#allocation3], 1 }

</bundles_post_ra>
